<compile_context>
chip_gen: v7x
topology: tpu7x:2x2x1
jax: 0.10.0
libtpu: 0.0.40
codegen_flags: <defaults>
</compile_context>

<pallas_src>
import math
import numpy as np
import jax
import jax.numpy as jnp
from jax import lax
from jax.experimental import pallas as pl
from jax.experimental.pallas import tpu as pltpu

# ---- problem sizes (small, consistent with the module's forward) ----
B = 2            # batch
S = 8            # sequence length (num patches + cls token, synthetic)
E = 32           # embedding_dim
H = 4            # num_heads
HD = E // H      # head dim
N = B * S        # flattened rows processed per kernel invocation
LN_EPS = 1e-5
SCALE = 1.0 / math.sqrt(HD)


def msa_kernel(x_ref, w_qkv_ref, b_qkv_ref, w_out_ref, b_out_ref, bias_ref,
               o_ref, ctx_ref):
    # x_ref: (N, E) slab containing every batch row (single grid step).
    x = x_ref[...].astype(jnp.float32)

    # ---- LayerNorm statistics only (gamma/beta are folded into w_qkv/b_qkv) ----
    mean = jnp.mean(x, axis=-1, keepdims=True)
    xc = x - mean
    var = jnp.mean(xc * xc, axis=-1, keepdims=True)
    x_n = xc * lax.rsqrt(var + LN_EPS)                       # (N, E)

    # ---- fused QKV projection: weight pre-transposed to (E, 3E), bias (1, 3E) ----
    qkv = jnp.dot(x_n, w_qkv_ref[...],
                  preferred_element_type=jnp.float32) + b_qkv_ref[...]      # (N, 3E)
    q = qkv[:, 0 * E:1 * E]        # already scaled by 1/sqrt(HD) in the wrapper
    k = qkv[:, 1 * E:2 * E]
    v = qkv[:, 2 * E:3 * E]

    # Additive block-diagonal mask (0 within a batch element, -1e30 across) so all
    # batch rows share one score matmul per head.
    attn_bias = bias_ref[...]                                # (N, N)

    # ---- per-head attention; context written directly into lane offsets (no concat) ----
    for h in range(H):
        sl = slice(h * HD, (h + 1) * HD)
        qh = q[:, sl]
        kh = k[:, sl]
        vh = v[:, sl]
        # q @ k^T without an explicit transpose (contract dim 1 of both operands).
        s = lax.dot_general(qh, kh, (((1,), (1,)), ((), ())),
                            preferred_element_type=jnp.float32)             # (N, N)
        s = s + attn_bias
        s = s - jnp.max(s, axis=-1, keepdims=True)
        p = jnp.exp(s)
        p = p * pl.reciprocal(jnp.sum(p, axis=-1, keepdims=True), approx=True)
        ctx_ref[:, sl] = jnp.dot(p, vh, preferred_element_type=jnp.float32)

    # ---- output projection: weight pre-transposed to (E, E), bias (1, E) ----
    out = jnp.dot(ctx_ref[...], w_out_ref[...],
                  preferred_element_type=jnp.float32) + b_out_ref[...]
    o_ref[...] = out.astype(o_ref.dtype)


def msa_block(x, gamma, beta, w_in, b_in, w_out, b_out):
    """Forward of LayerNorm + nn.MultiheadAttention(self-attention, batch_first=True)."""
    Bx, Sx, Ex = x.shape
    n = Bx * Sx
    f32 = jnp.float32

    # Fold the LayerNorm affine into the QKV projection (one-time wrapper-side XLA ops):
    #   (x_n*gamma + beta) @ W_in^T + b_in == x_n @ (gamma[:,None] * W_in^T) + (W_in @ beta + b_in)
    w_qkv = (w_in * gamma[None, :]).T.astype(f32)            # (E, 3E), pre-transposed
    b_qkv = (b_in + w_in @ beta).astype(f32)                 # (3E,)
    # Fold the 1/sqrt(head_dim) query scale into the Q columns of the fused projection.
    scale_vec = jnp.concatenate(
        [jnp.full((Ex,), SCALE, f32), jnp.ones((2 * Ex,), f32)])
    w_qkv = w_qkv * scale_vec[None, :]
    b_qkv = (b_qkv * scale_vec).reshape(1, 3 * Ex)

    w_out_t = w_out.T.astype(f32)                            # (E, E), pre-transposed
    b_out2 = b_out.reshape(1, Ex).astype(f32)

    # Additive attention bias that keeps attention block-diagonal over batch elements.
    row_batch = jnp.arange(n) // Sx
    same = row_batch[:, None] == row_batch[None, :]
    attn_bias = jnp.where(same, 0.0, -1e30).astype(f32)      # (N, N)

    x2 = x.reshape(n, Ex)

    out = pl.pallas_call(
        msa_kernel,
        out_shape=jax.ShapeDtypeStruct((n, Ex), x.dtype),
        grid_spec=pltpu.PrefetchScalarGridSpec(
            num_scalar_prefetch=0,
            grid=(1,),                                        # single step: everything fits VMEM (<100 KiB)
            in_specs=[
                pl.BlockSpec((n, Ex), lambda i: (0, 0)),          # x slab (B*S, E)
                pl.BlockSpec((Ex, 3 * Ex), lambda i: (0, 0)),     # fused QKV weight (E, 3E)
                pl.BlockSpec((1, 3 * Ex), lambda i: (0, 0)),      # fused QKV bias
                pl.BlockSpec((Ex, Ex), lambda i: (0, 0)),         # out-proj weight^T
                pl.BlockSpec((1, Ex), lambda i: (0, 0)),          # out-proj bias
                pl.BlockSpec((n, n), lambda i: (0, 0)),           # batch block-diagonal bias
            ],
            out_specs=pl.BlockSpec((n, Ex), lambda i: (0, 0)),
            scratch_shapes=[pltpu.VMEM((n, Ex), jnp.float32)],    # per-head context buffer
        ),
        compiler_params=pltpu.CompilerParams(
            dimension_semantics=("arbitrary",)),
    )(x2, w_qkv, b_qkv, w_out_t, b_out2, attn_bias)
    return out.reshape(Bx, Sx, Ex)


def reference(x, gamma, beta, w_in, b_in, w_out, b_out):
    # pure-JAX reference of the same math (original, unfolded parameters)
    mean = jnp.mean(x, axis=-1, keepdims=True)
    var = jnp.mean((x - mean) ** 2, axis=-1, keepdims=True)
    x_ln = (x - mean) / jnp.sqrt(var + LN_EPS) * gamma + beta
    qkv = jnp.einsum('bse,fe->bsf', x_ln, w_in) + b_in
    q, k, v = jnp.split(qkv, 3, axis=-1)

    def heads(t):
        return t.reshape(B, S, H, HD).transpose(0, 2, 1, 3)

    qh, kh, vh = heads(q) * SCALE, heads(k), heads(v)
    scores = jnp.einsum('bhqd,bhkd->bhqk', qh, kh)
    p = jax.nn.softmax(scores, axis=-1)
    ctx = jnp.einsum('bhqk,bhkd->bhqd', p, vh).transpose(0, 2, 1, 3).reshape(B, S, E)
    return jnp.einsum('bse,fe->bsf', ctx, w_out) + b_out


if __name__ == "__main__":
    key = jax.random.PRNGKey(0)
    kx, kg, kb, kw1, kb1, kw2, kb2 = jax.random.split(key, 7)

    x = jax.random.normal(kx, (B, S, E), dtype=jnp.float32)

    # LayerNorm affine (PyTorch default init is ones/zeros; randomized here so the
    # wrapper-side gamma/beta folding is actually exercised by the check).
    gamma = 1.0 + 0.1 * jax.random.normal(kg, (E,), dtype=jnp.float32)
    beta = 0.1 * jax.random.normal(kb, (E,), dtype=jnp.float32)

    # MultiheadAttention params (deterministic synthetic init)
    w_in = jax.random.normal(kw1, (3 * E, E), dtype=jnp.float32) * 0.05
    b_in = jax.random.normal(kb1, (3 * E,), dtype=jnp.float32) * 0.05
    w_out = jax.random.normal(kw2, (E, E), dtype=jnp.float32) * 0.05
    b_out = jax.random.normal(kb2, (E,), dtype=jnp.float32) * 0.05

    out = jax.block_until_ready(msa_block(x, gamma, beta, w_in, b_in, w_out, b_out))
    ref = jax.block_until_ready(reference(x, gamma, beta, w_in, b_in, w_out, b_out))

    # Tolerance relaxed (was 1e-5) because the softmax normalization now uses the EUP
    # approximate reciprocal (pl.reciprocal(approx=True)) per the performance review.
    np.testing.assert_allclose(np.asarray(out), np.asarray(ref), rtol=1e-2, atol=1e-3)

    print("KERNEL_OK")
</pallas_src>

<mosaic_0001>
module attributes {stable_mosaic.version = 11 : i64} {
  func.func @msa_kernel(%arg0: i32, %arg1: memref<16x32xf32, #tpu.memory_space<vmem>>, %arg2: memref<32x96xf32, #tpu.memory_space<vmem>>, %arg3: memref<1x96xf32, #tpu.memory_space<vmem>>, %arg4: memref<32x32xf32, #tpu.memory_space<vmem>>, %arg5: memref<1x32xf32, #tpu.memory_space<vmem>>, %arg6: memref<16x16xf32, #tpu.memory_space<vmem>>, %arg7: memref<16x32xf32, #tpu.memory_space<vmem>>, %arg8: memref<16x32xf32, #tpu.memory_space<vmem>>) attributes {dimension_semantics = [#tpu.dimension_semantics<arbitrary>], iteration_bounds = array<i64: 1>, scalar_prefetch = 0 : i64, scratch_operands = 1 : i64, tpu.core_type = #tpu.core_type<tc>, window_params = [{pipeline_mode = #tpu.pipeline_mode<synchronous>, transform_indices = @transform_0, window_bounds = array<i64: 16, 32>}, {pipeline_mode = #tpu.pipeline_mode<synchronous>, transform_indices = @transform_1, window_bounds = array<i64: 32, 96>}, {pipeline_mode = #tpu.pipeline_mode<synchronous>, transform_indices = @transform_2, window_bounds = array<i64: 1, 96>}, {pipeline_mode = #tpu.pipeline_mode<synchronous>, transform_indices = @transform_3, window_bounds = array<i64: 32, 32>}, {pipeline_mode = #tpu.pipeline_mode<synchronous>, transform_indices = @transform_4, window_bounds = array<i64: 1, 32>}, {pipeline_mode = #tpu.pipeline_mode<synchronous>, transform_indices = @transform_5, window_bounds = array<i64: 16, 16>}, {pipeline_mode = #tpu.pipeline_mode<synchronous>, transform_indices = @transform_6, window_bounds = array<i64: 16, 32>}]} {
    %c0 = arith.constant 0 : index
    %c0_0 = arith.constant 0 : index
    %0 = vector.load %arg1[%c0, %c0_0] : memref<16x32xf32, #tpu.memory_space<vmem>>, vector<16x32xf32>
    %cst = arith.constant dense<0.000000e+00> : vector<16xf32>
    %1 = vector.multi_reduction <add>, %0, %cst [1] : vector<16x32xf32> to vector<16xf32>
    %2 = vector.shape_cast %1 : vector<16xf32> to vector<16x1xf32>
    %cst_1 = arith.constant 3.200000e+01 : f32
    %3 = vector.broadcast %cst_1 : f32 to vector<16x1xf32>
    %4 = arith.divf %2, %3 : vector<16x1xf32>
    %5 = vector.broadcast %4 : vector<16x1xf32> to vector<16x32xf32>
    %6 = arith.subf %0, %5 : vector<16x32xf32>
    %7 = arith.mulf %6, %6 : vector<16x32xf32>
    %cst_2 = arith.constant dense<0.000000e+00> : vector<16xf32>
    %8 = vector.multi_reduction <add>, %7, %cst_2 [1] : vector<16x32xf32> to vector<16xf32>
    %9 = vector.shape_cast %8 : vector<16xf32> to vector<16x1xf32>
    %cst_3 = arith.constant 3.200000e+01 : f32
    %10 = vector.broadcast %cst_3 : f32 to vector<16x1xf32>
    %11 = arith.divf %9, %10 : vector<16x1xf32>
    %cst_4 = arith.constant 9.99999974E-6 : f32
    %12 = vector.broadcast %cst_4 : f32 to vector<16x1xf32>
    %13 = arith.addf %11, %12 : vector<16x1xf32>
    %14 = math.rsqrt %13 : vector<16x1xf32>
    %15 = vector.broadcast %14 : vector<16x1xf32> to vector<16x32xf32>
    %16 = arith.mulf %6, %15 : vector<16x32xf32>
    %c0_5 = arith.constant 0 : index
    %c0_6 = arith.constant 0 : index
    %17 = vector.load %arg2[%c0_5, %c0_6] : memref<32x96xf32, #tpu.memory_space<vmem>>, vector<32x96xf32>
    %cst_7 = arith.constant dense<0.000000e+00> : vector<16x96xf32>
    %18 = tpu.matmul %16, %17, %cst_7 {dimension_numbers = #tpu.dot_dimension_numbers<[1], [0], [0], [1], [0, 0, 1, 1], [], []>} : vector<16x32xf32>, vector<32x96xf32>, vector<16x96xf32> -> vector<16x96xf32>
    %c0_8 = arith.constant 0 : index
    %c0_9 = arith.constant 0 : index
    %19 = vector.load %arg3[%c0_8, %c0_9] : memref<1x96xf32, #tpu.memory_space<vmem>>, vector<1x96xf32>
    %20 = vector.broadcast %19 : vector<1x96xf32> to vector<16x96xf32>
    %21 = arith.addf %18, %20 : vector<16x96xf32>
    %22 = vector.extract_strided_slice %21 {offsets = [0, 0], sizes = [16, 32], strides = [1, 1]} : vector<16x96xf32> to vector<16x32xf32>
    %23 = vector.extract_strided_slice %21 {offsets = [0, 32], sizes = [16, 32], strides = [1, 1]} : vector<16x96xf32> to vector<16x32xf32>
    %24 = vector.extract_strided_slice %21 {offsets = [0, 64], sizes = [16, 32], strides = [1, 1]} : vector<16x96xf32> to vector<16x32xf32>
    %c0_10 = arith.constant 0 : index
    %c0_11 = arith.constant 0 : index
    %25 = vector.load %arg6[%c0_10, %c0_11] : memref<16x16xf32, #tpu.memory_space<vmem>>, vector<16x16xf32>
    %26 = vector.extract_strided_slice %22 {offsets = [0, 0], sizes = [16, 8], strides = [1, 1]} : vector<16x32xf32> to vector<16x8xf32>
    %27 = vector.extract_strided_slice %23 {offsets = [0, 0], sizes = [16, 8], strides = [1, 1]} : vector<16x32xf32> to vector<16x8xf32>
    %28 = vector.extract_strided_slice %24 {offsets = [0, 0], sizes = [16, 8], strides = [1, 1]} : vector<16x32xf32> to vector<16x8xf32>
    %cst_12 = arith.constant dense<0.000000e+00> : vector<16x16xf32>
    %29 = tpu.matmul %26, %27, %cst_12 {dimension_numbers = #tpu.dot_dimension_numbers<[1], [1], [0], [0], [0, 0, 1, 0], [], []>} : vector<16x8xf32>, vector<16x8xf32>, vector<16x16xf32> -> vector<16x16xf32>
    %30 = arith.addf %29, %25 : vector<16x16xf32>
    %cst_13 = arith.constant dense<0xFF800000> : vector<16xf32>
    %31 = vector.multi_reduction <maximumf>, %30, %cst_13 [1] : vector<16x16xf32> to vector<16xf32>
    %32 = vector.shape_cast %31 : vector<16xf32> to vector<16x1xf32>
    %33 = vector.broadcast %32 : vector<16x1xf32> to vector<16x16xf32>
    %34 = arith.subf %30, %33 : vector<16x16xf32>
    %35 = math.exp %34 : vector<16x16xf32>
    %cst_14 = arith.constant dense<0.000000e+00> : vector<16xf32>
    %36 = vector.multi_reduction <add>, %35, %cst_14 [1] : vector<16x16xf32> to vector<16xf32>
    %37 = vector.shape_cast %36 : vector<16xf32> to vector<16x1xf32>
    %38 = tpu.reciprocal %37 {approx = true} : vector<16x1xf32> -> vector<16x1xf32>
    %39 = vector.broadcast %38 : vector<16x1xf32> to vector<16x16xf32>
    %40 = arith.mulf %35, %39 : vector<16x16xf32>
    %cst_15 = arith.constant dense<0.000000e+00> : vector<16x8xf32>
    %41 = tpu.matmul %40, %28, %cst_15 {dimension_numbers = #tpu.dot_dimension_numbers<[1], [0], [0], [1], [0, 0, 1, 1], [], []>} : vector<16x16xf32>, vector<16x8xf32>, vector<16x8xf32> -> vector<16x8xf32>
    %c0_16 = arith.constant 0 : index
    %c0_17 = arith.constant 0 : index
    %42 = vector.load %arg8[%c0_16, %c0_17] : memref<16x32xf32, #tpu.memory_space<vmem>>, vector<16x8xf32>
    tpu.vector_store %arg8[%c0_16, %c0_17], %41 {strides = array<i32>} : memref<16x32xf32, #tpu.memory_space<vmem>>, vector<16x8xf32>,
    %43 = vector.extract_strided_slice %22 {offsets = [0, 8], sizes = [16, 8], strides = [1, 1]} : vector<16x32xf32> to vector<16x8xf32>
    %44 = vector.extract_strided_slice %23 {offsets = [0, 8], sizes = [16, 8], strides = [1, 1]} : vector<16x32xf32> to vector<16x8xf32>
    %45 = vector.extract_strided_slice %24 {offsets = [0, 8], sizes = [16, 8], strides = [1, 1]} : vector<16x32xf32> to vector<16x8xf32>
    %cst_18 = arith.constant dense<0.000000e+00> : vector<16x16xf32>
    %46 = tpu.matmul %43, %44, %cst_18 {dimension_numbers = #tpu.dot_dimension_numbers<[1], [1], [0], [0], [0, 0, 1, 0], [], []>} : vector<16x8xf32>, vector<16x8xf32>, vector<16x16xf32> -> vector<16x16xf32>
    %47 = arith.addf %46, %25 : vector<16x16xf32>
    %cst_19 = arith.constant dense<0xFF800000> : vector<16xf32>
    %48 = vector.multi_reduction <maximumf>, %47, %cst_19 [1] : vector<16x16xf32> to vector<16xf32>
    %49 = vector.shape_cast %48 : vector<16xf32> to vector<16x1xf32>
    %50 = vector.broadcast %49 : vector<16x1xf32> to vector<16x16xf32>
    %51 = arith.subf %47, %50 : vector<16x16xf32>
    %52 = math.exp %51 : vector<16x16xf32>
    %cst_20 = arith.constant dense<0.000000e+00> : vector<16xf32>
    %53 = vector.multi_reduction <add>, %52, %cst_20 [1] : vector<16x16xf32> to vector<16xf32>
    %54 = vector.shape_cast %53 : vector<16xf32> to vector<16x1xf32>
    %55 = tpu.reciprocal %54 {approx = true} : vector<16x1xf32> -> vector<16x1xf32>
    %56 = vector.broadcast %55 : vector<16x1xf32> to vector<16x16xf32>
    %57 = arith.mulf %52, %56 : vector<16x16xf32>
    %cst_21 = arith.constant dense<0.000000e+00> : vector<16x8xf32>
    %58 = tpu.matmul %57, %45, %cst_21 {dimension_numbers = #tpu.dot_dimension_numbers<[1], [0], [0], [1], [0, 0, 1, 1], [], []>} : vector<16x16xf32>, vector<16x8xf32>, vector<16x8xf32> -> vector<16x8xf32>
    %c0_22 = arith.constant 0 : index
    %c8 = arith.constant 8 : index
    %59 = vector.load %arg8[%c0_22, %c8] : memref<16x32xf32, #tpu.memory_space<vmem>>, vector<16x8xf32>
    tpu.vector_store %arg8[%c0_22, %c8], %58 {strides = array<i32>} : memref<16x32xf32, #tpu.memory_space<vmem>>, vector<16x8xf32>,
    %60 = vector.extract_strided_slice %22 {offsets = [0, 16], sizes = [16, 8], strides = [1, 1]} : vector<16x32xf32> to vector<16x8xf32>
    %61 = vector.extract_strided_slice %23 {offsets = [0, 16], sizes = [16, 8], strides = [1, 1]} : vector<16x32xf32> to vector<16x8xf32>
    %62 = vector.extract_strided_slice %24 {offsets = [0, 16], sizes = [16, 8], strides = [1, 1]} : vector<16x32xf32> to vector<16x8xf32>
    %cst_23 = arith.constant dense<0.000000e+00> : vector<16x16xf32>
    %63 = tpu.matmul %60, %61, %cst_23 {dimension_numbers = #tpu.dot_dimension_numbers<[1], [1], [0], [0], [0, 0, 1, 0], [], []>} : vector<16x8xf32>, vector<16x8xf32>, vector<16x16xf32> -> vector<16x16xf32>
    %64 = arith.addf %63, %25 : vector<16x16xf32>
    %cst_24 = arith.constant dense<0xFF800000> : vector<16xf32>
    %65 = vector.multi_reduction <maximumf>, %64, %cst_24 [1] : vector<16x16xf32> to vector<16xf32>
    %66 = vector.shape_cast %65 : vector<16xf32> to vector<16x1xf32>
    %67 = vector.broadcast %66 : vector<16x1xf32> to vector<16x16xf32>
    %68 = arith.subf %64, %67 : vector<16x16xf32>
    %69 = math.exp %68 : vector<16x16xf32>
    %cst_25 = arith.constant dense<0.000000e+00> : vector<16xf32>
    %70 = vector.multi_reduction <add>, %69, %cst_25 [1] : vector<16x16xf32> to vector<16xf32>
    %71 = vector.shape_cast %70 : vector<16xf32> to vector<16x1xf32>
    %72 = tpu.reciprocal %71 {approx = true} : vector<16x1xf32> -> vector<16x1xf32>
    %73 = vector.broadcast %72 : vector<16x1xf32> to vector<16x16xf32>
    %74 = arith.mulf %69, %73 : vector<16x16xf32>
    %cst_26 = arith.constant dense<0.000000e+00> : vector<16x8xf32>
    %75 = tpu.matmul %74, %62, %cst_26 {dimension_numbers = #tpu.dot_dimension_numbers<[1], [0], [0], [1], [0, 0, 1, 1], [], []>} : vector<16x16xf32>, vector<16x8xf32>, vector<16x8xf32> -> vector<16x8xf32>
    %c0_27 = arith.constant 0 : index
    %c16 = arith.constant 16 : index
    %76 = vector.load %arg8[%c0_27, %c16] : memref<16x32xf32, #tpu.memory_space<vmem>>, vector<16x8xf32>
    tpu.vector_store %arg8[%c0_27, %c16], %75 {strides = array<i32>} : memref<16x32xf32, #tpu.memory_space<vmem>>, vector<16x8xf32>,
    %77 = vector.extract_strided_slice %22 {offsets = [0, 24], sizes = [16, 8], strides = [1, 1]} : vector<16x32xf32> to vector<16x8xf32>
    %78 = vector.extract_strided_slice %23 {offsets = [0, 24], sizes = [16, 8], strides = [1, 1]} : vector<16x32xf32> to vector<16x8xf32>
    %79 = vector.extract_strided_slice %24 {offsets = [0, 24], sizes = [16, 8], strides = [1, 1]} : vector<16x32xf32> to vector<16x8xf32>
    %cst_28 = arith.constant dense<0.000000e+00> : vector<16x16xf32>
    %80 = tpu.matmul %77, %78, %cst_28 {dimension_numbers = #tpu.dot_dimension_numbers<[1], [1], [0], [0], [0, 0, 1, 0], [], []>} : vector<16x8xf32>, vector<16x8xf32>, vector<16x16xf32> -> vector<16x16xf32>
    %81 = arith.addf %80, %25 : vector<16x16xf32>
    %cst_29 = arith.constant dense<0xFF800000> : vector<16xf32>
    %82 = vector.multi_reduction <maximumf>, %81, %cst_29 [1] : vector<16x16xf32> to vector<16xf32>
    %83 = vector.shape_cast %82 : vector<16xf32> to vector<16x1xf32>
    %84 = vector.broadcast %83 : vector<16x1xf32> to vector<16x16xf32>
    %85 = arith.subf %81, %84 : vector<16x16xf32>
    %86 = math.exp %85 : vector<16x16xf32>
    %cst_30 = arith.constant dense<0.000000e+00> : vector<16xf32>
    %87 = vector.multi_reduction <add>, %86, %cst_30 [1] : vector<16x16xf32> to vector<16xf32>
    %88 = vector.shape_cast %87 : vector<16xf32> to vector<16x1xf32>
    %89 = tpu.reciprocal %88 {approx = true} : vector<16x1xf32> -> vector<16x1xf32>
    %90 = vector.broadcast %89 : vector<16x1xf32> to vector<16x16xf32>
    %91 = arith.mulf %86, %90 : vector<16x16xf32>
    %cst_31 = arith.constant dense<0.000000e+00> : vector<16x8xf32>
    %92 = tpu.matmul %91, %79, %cst_31 {dimension_numbers = #tpu.dot_dimension_numbers<[1], [0], [0], [1], [0, 0, 1, 1], [], []>} : vector<16x16xf32>, vector<16x8xf32>, vector<16x8xf32> -> vector<16x8xf32>
    %c0_32 = arith.constant 0 : index
    %c24 = arith.constant 24 : index
    %93 = vector.load %arg8[%c0_32, %c24] : memref<16x32xf32, #tpu.memory_space<vmem>>, vector<16x8xf32>
    tpu.vector_store %arg8[%c0_32, %c24], %92 {strides = array<i32>} : memref<16x32xf32, #tpu.memory_space<vmem>>, vector<16x8xf32>,
    %c0_33 = arith.constant 0 : index
    %c0_34 = arith.constant 0 : index
    %94 = vector.load %arg8[%c0_33, %c0_34] : memref<16x32xf32, #tpu.memory_space<vmem>>, vector<16x32xf32>
    %c0_35 = arith.constant 0 : index
    %c0_36 = arith.constant 0 : index
    %95 = vector.load %arg4[%c0_35, %c0_36] : memref<32x32xf32, #tpu.memory_space<vmem>>, vector<32x32xf32>
    %cst_37 = arith.constant dense<0.000000e+00> : vector<16x32xf32>
    %96 = tpu.matmul %94, %95, %cst_37 {dimension_numbers = #tpu.dot_dimension_numbers<[1], [0], [0], [1], [0, 0, 1, 1], [], []>} : vector<16x32xf32>, vector<32x32xf32>, vector<16x32xf32> -> vector<16x32xf32>
    %c0_38 = arith.constant 0 : index
    %c0_39 = arith.constant 0 : index
    %97 = vector.load %arg5[%c0_38, %c0_39] : memref<1x32xf32, #tpu.memory_space<vmem>>, vector<1x32xf32>
    %98 = vector.broadcast %97 : vector<1x32xf32> to vector<16x32xf32>
    %99 = arith.addf %96, %98 : vector<16x32xf32>
    %c0_40 = arith.constant 0 : index
    %c0_41 = arith.constant 0 : index
    %100 = vector.load %arg7[%c0_40, %c0_41] : memref<16x32xf32, #tpu.memory_space<vmem>>, vector<16x32xf32>
    tpu.vector_store %arg7[%c0_40, %c0_41], %99 {strides = array<i32>} : memref<16x32xf32, #tpu.memory_space<vmem>>, vector<16x32xf32>,
    return
  }
  func.func @transform_0(%arg0: i32) -> (i32, i32) {
    %c0_i32 = arith.constant 0 : i32
    %c0_i32_0 = arith.constant 0 : i32
    %c0_i32_1 = arith.constant 0 : i32
    return %c0_i32, %c0_i32_0 : i32, i32
  }
  func.func @transform_1(%arg0: i32) -> (i32, i32) {
    %c0_i32 = arith.constant 0 : i32
    %c0_i32_0 = arith.constant 0 : i32
    %c0_i32_1 = arith.constant 0 : i32
    return %c0_i32, %c0_i32_0 : i32, i32
  }
  func.func @transform_2(%arg0: i32) -> (i32, i32) {
    %c0_i32 = arith.constant 0 : i32
    %c0_i32_0 = arith.constant 0 : i32
    %c0_i32_1 = arith.constant 0 : i32
    return %c0_i32, %c0_i32_0 : i32, i32
  }
  func.func @transform_3(%arg0: i32) -> (i32, i32) {
    %c0_i32 = arith.constant 0 : i32
    %c0_i32_0 = arith.constant 0 : i32
    %c0_i32_1 = arith.constant 0 : i32
    return %c0_i32, %c0_i32_0 : i32, i32
  }
  func.func @transform_4(%arg0: i32) -> (i32, i32) {
    %c0_i32 = arith.constant 0 : i32
    %c0_i32_0 = arith.constant 0 : i32
    %c0_i32_1 = arith.constant 0 : i32
    return %c0_i32, %c0_i32_0 : i32, i32
  }
  func.func @transform_5(%arg0: i32) -> (i32, i32) {
    %c0_i32 = arith.constant 0 : i32
    %c0_i32_0 = arith.constant 0 : i32
    %c0_i32_1 = arith.constant 0 : i32
    return %c0_i32, %c0_i32_0 : i32, i32
  }
  func.func @transform_6(%arg0: i32) -> (i32, i32) {
    %c0_i32 = arith.constant 0 : i32
    %c0_i32_0 = arith.constant 0 : i32
    %c0_i32_1 = arith.constant 0 : i32
    return %c0_i32, %c0_i32_0 : i32, i32
  }
}

</mosaic_0001>

<bundles_post_ra>
// kernel: tpu_custom_call.1
= control target key start
LH: loop header
LB: loop body
LE: loop exit
PB: predicated region body
PF: predicated region fallthrough
CT: control target
= control target key end

     0   :  { %11 = vsyncpa [#allocation4], 0  ;;  %s1782_s0 = inlined_call_operand.hbm [shape: f32[16,32], index: 0, kind: input, shape index: {}]   ;;  %s1783_s1 = inlined_call_operand.hbm [shape: f32[32,96], index: 1, kind: input, shape index: {}]   ;;  %s1784_s2 = inlined_call_operand.vmem [shape: f32[1,96], index: 2, kind: input, shape index: {}]   ;;  %s1785_s3 = inlined_call_operand.hbm [shape: f32[32,32], index: 3, kind: input, shape index: {}]   ;;  %s1786_s4 = inlined_call_operand.vmem [shape: f32[1,32], index: 4, kind: input, shape index: {}]   ;;  %s1787_s5 = inlined_call_operand.vmem [shape: f32[16,16], index: 5, kind: input, shape index: {}]   ;;  %s1788_s6 = inlined_call_operand.hbm [shape: f32[16,32], index: 6, kind: output, shape index: {}]  }
   0x1   :  { %12 = vsyncpa [#allocation7], 0 }
   0x2   :  { %13 = vsyncpa [#allocation5], 0  ;;  %s1535_s21 = smov [#allocation6]   ;;  %s1536_s23 = smov [#allocation3]  }
   0x3   :  { %s31_s22 = sshll.u32 %s1535_s21, 4  ;;  %s19_s24 = sshll.u32 %s1536_s23, 4  ;;  %s32_s22 = int_to_ptr.vmem [resolvable:$true] %s31_s22  ;;  %s1589_s24 = int_to_ptr.vmem [resolvable:$true] %s19_s24 }
   0x4   :  { %s1441_s27 = scalar_lea.hbm %s1783_s1, 512 }
   0x5   :  { %p1442_p0 = scmp.ne.s32.totalorder %s1783_s1, %s1441_s27  ;;  %p1445_p1 = scmp.lt.u32.totalorder %s1441_s27, %s1783_s1 }
   0x7   :  { %p1447_p2 = pnand %p1445_p1, %p1442_p0 }
   0x9   :  { %1450 = shalt.err (!%p1447_p2)
}
   0xa   :  { %s1451_s8 = scalar_lea.vmem %s32_s22, 512  ;;  %p1456_p4 = scmp.lt.s32.totalorder %s32_s22, %s32_s22 }
   0xb   :  { %p1452_p3 = scmp.ne.s32.totalorder %s32_s22, %s1451_s8  ;;  %p1457_p5 = scmp.lt.s32.totalorder %s1451_s8, %s1451_s8 }
   0xd   :  { %p1458_p6 = por %p1457_p5, %p1456_p4 }
   0xf   :  { %p1459_p7 = pnand %p1458_p6, %p1452_p3 }
  0x11   :  { %1462 = shalt.err (!%p1459_p7)
}
  0x12   :  { %s1537_s9 = smov 128   ;;  %s1538_s10 = smov 8  }
  0x13   :  { %37 = dma.hbm_to_vmem [thread:$0]  %s1783_s1, 512, %s32_s22, [#allocation7], %s1537_s9, %s1537_s9, %s1538_s10  }
  0x14   :  { %s1463_s15 = scalar_lea.hbm %s1782_s0, 256 }
  0x15   :  { %p1464_p8 = scmp.ne.s32.totalorder %s1782_s0, %s1463_s15  ;;  %p1467_p9 = scmp.lt.u32.totalorder %s1463_s15, %s1782_s0 }
  0x17   :  { %p1469_p10 = pnand %p1467_p9, %p1464_p8 }
  0x19   :  { %1472 = shalt.err (!%p1469_p10)
}
  0x1a   :  { %s1473_s20 = scalar_lea.vmem %s1589_s24, 256  ;;  %p1478_p12 = scmp.lt.s32.totalorder %s1589_s24, %s1589_s24 }
  0x1b   :  { %p1474_p11 = scmp.ne.s32.totalorder %s1589_s24, %s1473_s20  ;;  %p1479_p13 = scmp.lt.s32.totalorder %s1473_s20, %s1473_s20 }
  0x1d   :  { %p1480_p0 = por %p1479_p13, %p1478_p12 }
  0x1f   :  { %p1481_p1 = pnand %p1480_p0, %p1474_p11 }
  0x21   :  { %1484 = shalt.err (!%p1481_p1)
}
  0x22   :  { %25 = dma.hbm_to_vmem [thread:$0]  %s1782_s0, 256, %s1589_s24, [#allocation4], %s1537_s9, %s1537_s9, %s1538_s10  }
  0x23   :  { %s1539_s22 = smov [#allocation8]   ;;  %s1485_s27 = scalar_lea.hbm %s1785_s3, 512 }
  0x24   :  { %s45_s23 = sshll.u32 %s1539_s22, 4  ;;  %p1486_p2 = scmp.ne.s32.totalorder %s1785_s3, %s1485_s27  ;;  %s46_s23 = int_to_ptr.vmem [resolvable:$true] %s45_s23 }
  0x25   :  { %p1489_p3 = scmp.lt.u32.totalorder %s1485_s27, %s1785_s3 }
  0x27   :  { %p1491_p4 = pnand %p1489_p3, %p1486_p2 }
  0x29   :  { %1494 = shalt.err (!%p1491_p4)
}
  0x2a   :  { %s1495_s8 = scalar_lea.vmem %s46_s23, 512  ;;  %p1500_p6 = scmp.lt.s32.totalorder %s46_s23, %s46_s23 }
  0x2b   :  { %p1496_p5 = scmp.ne.s32.totalorder %s46_s23, %s1495_s8  ;;  %p1501_p7 = scmp.lt.s32.totalorder %s1495_s8, %s1495_s8 }
  0x2d   :  { %p1502_p8 = por %p1501_p7, %p1500_p6 }
  0x2f   :  { %p1503_p9 = pnand %p1502_p8, %p1496_p5 }
  0x31   :  { %1506 = shalt.err (!%p1503_p9)
}
  0x32   :  { %51 = dma.hbm_to_vmem [thread:$0]  %s1785_s3, 512, %s46_s23, [#allocation7], %s1537_s9, %s1537_s9, %s1538_s10  }
  0x33   :  { %1529 = dma.done.wait [#allocation4], 256  }
  0x34   :  { %1530 = vsyncadd [#allocation4], 4294967040 }
  0x35   :  { %1531 = dma.done.wait [#allocation7], 1024  }
  0x36   :  { %1532 = vsyncadd [#allocation7], 4294966272  ;;  %vm67_vm0 = vcmask 261120   ;;  %v65_v0 = vld [vmem:[#allocation3] sm:$0xff]  ;;  %v66_v1 = vld [vmem:[#allocation3 + $0x8] sm:$0xff]  ;;  %vm195_vm1 = vcmask 64512  }
  0x37   :  { %v68_v2 = vsel %vm67_vm0, %v65_v0, 0.0  ;;  %v71_v3 = vsel %vm67_vm0, %v66_v1, 0.0  ;;  %v95_v14 = vld [vmem:[#allocation6] sm:$0xff]  ;;  %v96_v15 = vld [vmem:[#allocation6 + $0x8] sm:$0xff]  ;;  %v97_v16 = vld [vmem:[#allocation6 + $0x10] sm:$0xff]  ;;  %s1540_s12 = smov 96  }
  0x38   :  { %69 = vadd.xlane.f32.xlu0 %v68_v2  ;;  %v1290_v17 = vpack.c.bf16 %v96_v15, %v95_v14  ;;  %v98_v18 = vld [vmem:[#allocation6 + $0x18] sm:$0xff]  ;;  %v1138_v30 = vld [vmem:[%s1784_s2] ss:$0 sm:$0xff]  ;;  %s1541_s13 = smov 88   ;;  %s1542_s2 = smov 120   ;;  %vm1666_vm2 = vmpackc.low %vm195_vm1, %vm195_vm1  ;;  %vm279_vm3 = vcmask 130048  }
  0x39   :  { %v1294_v19 = vpack.c.bf16 %v98_v18, %v97_v16  ;;  %v1679_v41 = vld [vmem:[%s1787_s5] sm:$0xff]  ;;  %v1684_v43 = vld [vmem:[%s1787_s5 + $0x8] sm:$0xff]  ;;  %s1543_s5 = smov 64   ;;  %s1544_s18 = smov 56   ;;  %vm599_vm4 = vcmask 130112   ;;  %vm810_vm5 = vcmask 195712  }
  0x3a   :  { %1291 = vmatprep.subr.bf16.mxu0 %v1290_v17  ;;  %s1545_s19 = smov 112   ;;  %s1546_s20 = smov 80   ;;  %vm1021_vm6 = vcmask 261312  }
  0x3b   :  { %1293 = vmatpush3.bf16.msra.mxu0 %v1290_v17  ;;  %s1547_s1 = smov 48   ;;  %s1548_s21 = smov 104  }
  0x3c   :  { %72 = vadd.xlane.f32.xlu0 %v71_v3  ;;  %1295 = vmatprep.subr.bf16.mxu0 %v1294_v19  ;;  %s1549_s22 = smov 72   ;;  %s1550_s23 = smov 40  }
  0x3d   :  { %s1551_s25 = smov 16   ;;  %s1552_s26 = smov 24  }
  0x3e   :  { %s1553_s29 = smov [#allocation9]  }
  0x3f   :  { %1297 = vmatpush3.bf16.msra.mxu0 %v1294_v19  ;;  %s1125_s30 = sshll.u32 %s1553_s29, 4  ;;  %s1126_s30 = int_to_ptr.vmem [resolvable:$true] %s1125_s30 }
  0x40   :  { %s1507_s7 = scalar_lea.vmem %s1126_s30, 256  ;;  %p1512_p11 = scmp.lt.s32.totalorder %s1126_s30, %s1126_s30 }
  0x41   :  { %p1508_p10 = scmp.ne.s32.totalorder %s1126_s30, %s1507_s7  ;;  %p1513_p12 = scmp.lt.s32.totalorder %s1507_s7, %s1507_s7 }
  0x43   :  { %p1514_p13 = por %p1513_p12, %p1512_p11 }
  0x45   :  { %p1515_p0 = pnand %p1514_p13, %p1508_p10 }
  0xc5   :  { %v70_v4 = vpop.xlane.xlu0 %69 }
  0xc6   :  { %v75_v5 = vmul.f32 0.03125, %v70_v4 }
  0xc8   :  { %v77_v6 = vsub.f32 %v65_v0, %v75_v5 }
  0xc9   :  { %v73_v7 = vpop.xlane.xlu0 %72 }
  0xca   :  { %v76_v8 = vmul.f32 0.03125, %v73_v7  ;;  %v79_v9 = vmul.f32 %v77_v6, %v77_v6 }
  0xcc   :  { %v78_v10 = vsub.f32 %v66_v1, %v76_v8  ;;  %v81_v11 = vsel %vm67_vm0, %v79_v9, 0.0 }
  0xcd   :  { %82 = vadd.xlane.f32.xlu1 %v81_v11 }
  0xce   :  { %v80_v12 = vmul.f32 %v78_v10, %v78_v10 }
  0xd0   :  { %v84_v13 = vsel %vm67_vm0, %v80_v12, 0.0 }
  0xd1   :  { %85 = vadd.xlane.f32.xlu1 %v84_v13 }
 0x15a   :  { %v83_v20 = vpop.xlane.xlu1 %82 }
 0x15b   :  { %v87_v21 = vmul.f32 0.03125, %v83_v20 }
 0x15d   :  { %v89_v22 = vadd.f32 1e-05, %v87_v21 }
 0x15e   :  { %v86_v23 = vpop.xlane.xlu1 %85 }
 0x15f   :  { %1405 = vrsqrt.f32 %v89_v22  ;;  %v88_v24 = vmul.f32 0.03125, %v86_v23 }
 0x161   :  { %v90_v25 = vadd.f32 1e-05, %v88_v24 }
 0x163   :  { %1407 = vrsqrt.f32 %v90_v25 }
 0x169   :  { %v1406_v26 = vpop.eup %1405 }
 0x16a   :  { %v93_v27 = vmul.f32 %v1406_v26, %v77_v6 }
 0x16c   :  { %1220 = vmatprep.mubr.msk.f32.mxu0 %vm67_vm0, %v93_v27 }
 0x16d   :  { %v1408_v28 = vpop.eup %1407 }
 0x16e   :  { %v94_v29 = vmul.f32 %v1408_v28, %v78_v10 }
 0x170   :  { %1221 = vmatmul.mubr.msk.f32.vlgmr.msra.gmra.mrb[0].mxu0 %vm67_vm0, %v94_v29 }
 0x243   :  { %v1222_v31 = vpop.f32.mrb[0].mxu0 }
 0x244   :  { %v1650_v32 = vadd.f32 %v1222_v31, %v1138_v30  ;;  %v178_v33 = vpop.f32.mrb[1].mxu0 }
 0x245   :  { %v1652_v34 = vadd.f32 %v1138_v30, %v178_v33 }
 0x247   :  { %1227 = vmatprep.mubr.msk.f32.mxu1 %vm195_vm1, %v1652_v34  ;;  %v1658_v35 = vpack.i.bf16 %v1650_v32, %v1652_v34 }
 0x249   :  { %1366 = vrot.lane.b32.xlu0 %v1658_v35, %s1540_s12 }
 0x24d   :  { %1376 = vrot.lane.b32.xlu0 %v1658_v35, %s1541_s13 }
 0x251   :  { %391 = vrot.lane.b32.xlu0 %v1652_v34, %s1542_s2 }
 0x255   :  { %393 = vrot.lane.b32.xlu0 %v1650_v32, %s1542_s2 }
 0x2bb   :  { %v1367_v36 = vpop.permute.xlu0 %1366 }
 0x2bc   :  { %v1369_v37 = vunpack.i.h.bf16 %v1367_v36  ;;  %v1368_v38 = vunpack.i.l.bf16 %v1367_v36 }
 0x2be   :  { %v1298_v40 = vpack.c.bf16 %v1369_v37, %v1368_v38 }
 0x2bf   :  { %v1377_v61 = vpop.permute.xlu0 %1376 }
 0x2c0   :  { %1300 = vmatprep.subr.msk.bf16.mxu1 %vm1666_vm2, %v1298_v40  ;;  %v1379_v63 = vunpack.i.h.bf16 %v1377_v61  ;;  %v1378_v0 = vunpack.i.l.bf16 %v1377_v61 }
 0x2c1   :  { %1303 = vmatpush3.bf16.xpose.msk.msra.mxu1 %vm1666_vm2, %v1298_v40 }
 0x2c2   :  { %v1308_v4 = vpack.c.bf16 %v1379_v63, %v1378_v0 }
 0x2c3   :  { %v392_v9 = vpop.permute.xlu0 %391 }
 0x2c7   :  { %v394_v10 = vpop.permute.xlu0 %393 }
 0x2c8   :  { %1228 = vmatmul.mubr.msk.f32.vlgmr.msra.gmra.mrb[0].mxu1 %vm195_vm1, %v1650_v32 }
 0x39b   :  { %v1229_v42 = vpop.f32.mrb[0].mxu1 }
 0x39c   :  { %v270_v44 = vpop.f32.mrb[1].mxu1  ;;  %v276_v46 = vadd.f32 %v1229_v42, %v1684_v43 }
 0x39d   :  { %v271_v45 = vadd.f32 %v270_v44, %v1679_v41 }
 0x39e   :  { %v283_v48 = vsel %vm279_vm3, %v276_v46, -inf }
 0x39f   :  { %v280_v47 = vsel %vm279_vm3, %v271_v45, -inf }
 0x3a0   :  { %281 = vmax.xlane.f32.xlu1 %v280_v47 }
 0x3a4   :  { %284 = vmax.xlane.f32.xlu1 %v283_v48 }
 0x42d   :  { %v282_v49 = vpop.xlane.xlu1 %281 }
 0x42e   :  { %v286_v50 = vsub.f32 %v271_v45, %v282_v49 }
 0x430   :  { %v288_v53 = vmul.f32 1.442695, %v286_v50 }
 0x431   :  { %v285_v51 = vpop.xlane.xlu1 %284 }
 0x432   :  { %v287_v52 = vsub.f32 %v276_v46, %v285_v51 }
 0x434   :  { %v290_v54 = vmul.f32 1.442695, %v287_v52 }
 0x436   :  { %1409 = vpow2.f32 %v290_v54 }
 0x437   :  { %1411 = vpow2.f32 %v288_v53 }
 0x440   :  { %v1410_v55 = vpop.eup %1409 }
 0x441   :  { %v295_v56 = vsel %vm279_vm3, %v1410_v55, 0.0  ;;  %v1412_v57 = vpop.eup %1411 }
 0x442   :  { %296 = vadd.xlane.f32.xlu1 %v295_v56  ;;  %v292_v58 = vsel %vm279_vm3, %v1412_v57, 0.0 }
 0x446   :  { %293 = vadd.xlane.f32.xlu1 %v292_v58 }
 0x457   :  { %1371 = vrot.lane.b32.xlu1 %v1658_v35, %s1543_s5 }
 0x4cf   :  { %v297_v59 = vpop.xlane.xlu1 %296 }
 0x4d0   :  { %1413 = vrcp.f32 %v297_v59 }
 0x4d3   :  { %v294_v60 = vpop.xlane.xlu1 %293 }
 0x4d4   :  { %1415 = vrcp.f32 %v294_v60 }
 0x4d7   :  { %v1372_v62 = vpop.permute.xlu1 %1371 }
 0x4d8   :  { %v1374_v1 = vunpack.i.h.bf16 %v1372_v62  ;;  %v1373_v2 = vunpack.i.l.bf16 %v1372_v62 }
 0x4da   :  { %v1304_v3 = vpack.c.bf16 %v1374_v1, %v1373_v2  ;;  %v1414_v5 = vpop.eup %1413 }
 0x4db   :  { %v301_v8 = vmul.f32 %v1414_v5, %v1410_v55 }
 0x4dc   :  { %1305 = vmatprep.subr.bf16.mxu1 %v1304_v3 }
 0x4dd   :  { %1307 = vmatpush3.bf16.msra.mxu1 %v1304_v3 }
 0x4de   :  { %v1416_v6 = vpop.eup %1415  ;;  %1310 = vmatprep.subr.msk.bf16.mxu1 %vm1666_vm2, %v1308_v4 }
 0x4df   :  { %v300_v7 = vmul.f32 %v1416_v6, %v1412_v57 }
 0x4e1   :  { %1234 = vmatprep.mubr.msk.f32.mxu1 %vm279_vm3, %v300_v7 }
 0x4e2   :  { %1235 = vmatmul.mubr.msk.f32.vlgmr.msra.gmra.mrb[2].mxu1 %vm279_vm3, %v301_v8 }
 0x4e3   :  { %1241 = vmatprep.mubr.msk.f32.mxu1 %vm195_vm1, %v392_v9 }
 0x4e6   :  { %1313 = vmatpush3.bf16.xpose.msk.msra.mxu1 %vm1666_vm2, %v1308_v4 }
 0x4ed   :  { %1242 = vmatmul.mubr.msk.f32.vlgmr.msra.gmra.mrb[4].mxu1 %vm195_vm1, %v394_v10 }
 0x5b5   :  { %v1236_v11 = vpop.f32.mrb[2].mxu1 }
 0x5b6   :  { %390 = vst.msk [vmem:[#allocation2 + $0x8] sm:$0xff] %vm195_vm1, %v1236_v11  ;;  %v380_v12 = vpop.f32.mrb[3].mxu1 }
 0x5b7   :  { %389 = vst.msk [vmem:[#allocation2] sm:$0xff] %vm195_vm1, %v380_v12 }
 0x5c0   :  { %v1243_v13 = vpop.f32.mrb[4].mxu1 }
 0x5c1   :  { %v479_v14 = vadd.f32 %v1243_v13, %v1684_v43  ;;  %v473_v15 = vpop.f32.mrb[5].mxu1 }
 0x5c2   :  { %v474_v16 = vadd.f32 %v473_v15, %v1679_v41 }
 0x5c3   :  { %v485_v17 = vsel %vm279_vm3, %v479_v14, -inf }
 0x5c4   :  { %486 = vmax.xlane.f32.xlu0 %v485_v17  ;;  %v482_v18 = vsel %vm279_vm3, %v474_v16, -inf }
 0x5c5   :  { %483 = vmax.xlane.f32.xlu1 %v482_v18 }
 0x5d6   :  { %1381 = vrot.lane.b32.xlu1 %v1658_v35, %s1544_s18 }
 0x5da   :  { %602 = vrot.lane.b32.xlu1 %v1652_v34, %s1545_s19 }
 0x5de   :  { %604 = vrot.lane.b32.xlu1 %v1650_v32, %s1545_s19 }
 0x651   :  { %v487_v19 = vpop.xlane.xlu0 %486 }
 0x652   :  { %v489_v20 = vsub.f32 %v479_v14, %v487_v19  ;;  %v484_v21 = vpop.xlane.xlu1 %483 }
 0x653   :  { %v488_v22 = vsub.f32 %v474_v16, %v484_v21 }
 0x654   :  { %v492_v23 = vmul.f32 1.442695, %v489_v20 }
 0x655   :  { %v490_v24 = vmul.f32 1.442695, %v488_v22 }
 0x656   :  { %1417 = vpow2.f32 %v492_v23  ;;  %v1382_v25 = vpop.permute.xlu1 %1381 }
 0x657   :  { %v1384_v26 = vunpack.i.h.bf16 %v1382_v25  ;;  %v1383_v27 = vunpack.i.l.bf16 %v1382_v25  ;;  %1419 = vpow2.f32 %v490_v24 }
 0x659   :  { %v1314_v28 = vpack.c.bf16 %v1384_v26, %v1383_v27 }
 0x65a   :  { %v603_v49 = vpop.permute.xlu1 %602 }
 0x65b   :  { %1315 = vmatprep.subr.bf16.mxu0 %v1314_v28 }
 0x65c   :  { %1317 = vmatpush3.bf16.msra.mxu0 %v1314_v28 }
 0x65e   :  { %v605_v50 = vpop.permute.xlu1 %604 }
 0x660   :  { %v1418_v29 = vpop.eup %1417 }
 0x661   :  { %v497_v30 = vsel %vm279_vm3, %v1418_v29, 0.0  ;;  %v1420_v31 = vpop.eup %1419 }
 0x662   :  { %498 = vadd.xlane.f32.xlu0 %v497_v30  ;;  %v494_v33 = vsel %vm279_vm3, %v1420_v31, 0.0 }
 0x666   :  { %495 = vadd.xlane.f32.xlu0 %v494_v33 }
 0x67c   :  { %1386 = vrot.lane.b32.xlu0 %v1658_v35, %s1546_s20 }
 0x6ef   :  { %v499_v36 = vpop.xlane.xlu0 %498 }
 0x6f0   :  { %1421 = vrcp.f32 %v499_v36 }
 0x6f3   :  { %v496_v37 = vpop.xlane.xlu0 %495 }
 0x6f4   :  { %1423 = vrcp.f32 %v496_v37 }
 0x6f7   :  { %v1387_v38 = vpop.permute.xlu0 %1386 }
 0x6f8   :  { %v1389_v40 = vunpack.i.h.bf16 %v1387_v38  ;;  %v1388_v42 = vunpack.i.l.bf16 %v1387_v38 }
 0x6fa   :  { %v1318_v44 = vpack.c.bf16 %v1389_v40, %v1388_v42  ;;  %v1422_v45 = vpop.eup %1421 }
 0x6fb   :  { %v503_v48 = vmul.f32 %v1422_v45, %v1418_v29 }
 0x6fc   :  { %1320 = vmatprep.subr.msk.bf16.mxu0 %vm1666_vm2, %v1318_v44 }
 0x6fe   :  { %v1424_v46 = vpop.eup %1423 }
 0x6ff   :  { %v502_v47 = vmul.f32 %v1424_v46, %v1420_v31 }
 0x701   :  { %1248 = vmatprep.mubr.msk.f32.mxu0 %vm279_vm3, %v502_v47 }
 0x702   :  { %1249 = vmatmul.mubr.msk.f32.vlgmr.msra.gmra.mrb[2].mxu0 %vm279_vm3, %v503_v48 }
 0x703   :  { %1323 = vmatpush3.bf16.xpose.msk.msra.mxu0 %vm1666_vm2, %v1318_v44  ;;  %1255 = vmatprep.mubr.msk.f32.mxu0 %vm195_vm1, %v603_v49 }
 0x70a   :  { %1256 = vmatmul.mubr.msk.f32.vlgmr.msra.gmra.mrb[4].mxu0 %vm195_vm1, %v605_v50 }
 0x7d5   :  { %v1721_v51 = vpop.f32.mrb[2].mxu0 }
 0x7d6   :  { %v1723_v52 = vpop.f32.mrb[3].mxu0 }
 0x7dd   :  { %v1257_v53 = vpop.f32.mrb[4].mxu0 }
 0x7de   :  { %v690_v54 = vadd.f32 %v1257_v53, %v1684_v43  ;;  %v684_v55 = vpop.f32.mrb[5].mxu0 }
 0x7df   :  { %v685_v56 = vadd.f32 %v684_v55, %v1679_v41  ;;  %v1027_v55 = vld [vmem:[#allocation8 + $0x8] sm:$0xff] }
 0x7e0   :  { %v696_v57 = vsel %vm279_vm3, %v690_v54, -inf }
 0x7e1   :  { %697 = vmax.xlane.f32.xlu0 %v696_v57  ;;  %v693_v58 = vsel %vm279_vm3, %v685_v56, -inf  ;;  %v1029_v57 = vld [vmem:[#allocation8 + $0x18] sm:$0xff] }
 0x7e2   :  { %694 = vmax.xlane.f32.xlu1 %v693_v58 }
 0x7f3   :  { %1391 = vrot.lane.b32.xlu1 %v1658_v35, %s1547_s1 }
 0x7f7   :  { %813 = vrot.lane.b32.xlu1 %v1652_v34, %s1548_s21 }
 0x7fb   :  { %815 = vrot.lane.b32.xlu1 %v1650_v32, %s1548_s21 }
 0x86e   :  { %v698_v59 = vpop.xlane.xlu0 %697 }
 0x86f   :  { %v700_v60 = vsub.f32 %v690_v54, %v698_v59  ;;  %v695_v61 = vpop.xlane.xlu1 %694  ;;  %v1026_v54 = vld [vmem:[#allocation8] sm:$0xff] }
 0x870   :  { %v699_v62 = vsub.f32 %v685_v56, %v695_v61  ;;  %v1028_v56 = vld [vmem:[#allocation8 + $0x10] sm:$0xff] }
 0x871   :  { %v703_v63 = vmul.f32 1.442695, %v700_v60  ;;  %v1342_v58 = vpack.c.bf16 %v1029_v57, %v1028_v56 }
 0x872   :  { %v701_v0 = vmul.f32 1.442695, %v699_v62 }
 0x873   :  { %1425 = vpow2.f32 %v703_v63  ;;  %v1392_v1 = vpop.permute.xlu1 %1391 }
 0x874   :  { %v1394_v2 = vunpack.i.h.bf16 %v1392_v1  ;;  %v1393_v3 = vunpack.i.l.bf16 %v1392_v1  ;;  %1427 = vpow2.f32 %v701_v0  ;;  %v1165_v1 = vld [vmem:[%s1786_s4] ss:$0 sm:$0xff] }
 0x876   :  { %v1324_v4 = vpack.c.bf16 %v1394_v2, %v1393_v3 }
 0x877   :  { %v814_v17 = vpop.permute.xlu1 %813 }
 0x878   :  { %1325 = vmatprep.subr.bf16.mxu1 %v1324_v4 }
 0x879   :  { %1327 = vmatpush3.bf16.msra.mxu1 %v1324_v4 }
 0x87b   :  { %v816_v18 = vpop.permute.xlu1 %815 }
 0x87d   :  { %v1426_v5 = vpop.eup %1425 }
 0x87e   :  { %v708_v6 = vsel %vm279_vm3, %v1426_v5, 0.0  ;;  %v1428_v34 = vpop.eup %1427 }
 0x87f   :  { %709 = vadd.xlane.f32.xlu0 %v708_v6  ;;  %v705_v32 = vsel %vm279_vm3, %v1428_v34, 0.0 }
 0x883   :  { %706 = vadd.xlane.f32.xlu0 %v705_v32 }
 0x899   :  { %1396 = vrot.lane.b32.xlu0 %v1658_v35, %s1549_s22 }
 0x90c   :  { %v710_v7 = vpop.xlane.xlu0 %709 }
 0x90d   :  { %1429 = vrcp.f32 %v710_v7 }
 0x910   :  { %v707_v8 = vpop.xlane.xlu0 %706 }
 0x911   :  { %1431 = vrcp.f32 %v707_v8 }
 0x914   :  { %v1397_v9 = vpop.permute.xlu0 %1396 }
 0x915   :  { %v1399_v10 = vunpack.i.h.bf16 %v1397_v9  ;;  %v1398_v11 = vunpack.i.l.bf16 %v1397_v9 }
 0x917   :  { %v1328_v12 = vpack.c.bf16 %v1399_v10, %v1398_v11  ;;  %v1430_v13 = vpop.eup %1429 }
 0x918   :  { %v714_v16 = vmul.f32 %v1430_v13, %v1426_v5 }
 0x919   :  { %1330 = vmatprep.subr.msk.bf16.mxu1 %vm1666_vm2, %v1328_v12 }
 0x91b   :  { %v1432_v14 = vpop.eup %1431 }
 0x91c   :  { %v713_v15 = vmul.f32 %v1432_v14, %v1428_v34 }
 0x91e   :  { %1262 = vmatprep.mubr.msk.f32.mxu1 %vm279_vm3, %v713_v15 }
 0x91f   :  { %1263 = vmatmul.mubr.msk.f32.vlgmr.msra.gmra.mrb[6].mxu1 %vm279_vm3, %v714_v16 }
 0x920   :  { %1333 = vmatpush3.bf16.xpose.msk.msra.mxu1 %vm1666_vm2, %v1328_v12  ;;  %1269 = vmatprep.mubr.msk.f32.mxu1 %vm195_vm1, %v814_v17 }
 0x927   :  { %1270 = vmatmul.mubr.msk.f32.vlgmr.msra.gmra.mrb[8].mxu1 %vm195_vm1, %v816_v18 }
 0x9f2   :  { %v1264_v19 = vpop.f32.mrb[6].mxu1 }
 0x9f3   :  { %v793_v20 = vpop.f32.mrb[7].mxu1 }
 0x9fa   :  { %v1271_v21 = vpop.f32.mrb[8].mxu1 }
 0x9fb   :  { %v901_v22 = vadd.f32 %v1271_v21, %v1684_v43  ;;  %v895_v23 = vpop.f32.mrb[9].mxu1 }
 0x9fc   :  { %v896_v24 = vadd.f32 %v895_v23, %v1679_v41 }
 0x9fd   :  { %v907_v25 = vsel %vm279_vm3, %v901_v22, -inf }
 0x9fe   :  { %908 = vmax.xlane.f32.xlu0 %v907_v25  ;;  %v904_v26 = vsel %vm279_vm3, %v896_v24, -inf }
 0x9ff   :  { %905 = vmax.xlane.f32.xlu1 %v904_v26 }
 0xa10   :  { %1401 = vrot.lane.b32.xlu1 %v1658_v35, %s1550_s23 }
 0xa14   :  { %595 = vrot.lane.b32.xlu1 %v1721_v51, %s1538_s10 }
 0xa18   :  { %804 = vrot.lane.b32.xlu1 %v793_v20, %s1551_s25 }
 0xa1c   :  { %806 = vrot.lane.b32.xlu1 %v1264_v19, %s1551_s25 }
 0xa8b   :  { %v909_v39 = vpop.xlane.xlu0 %908 }
 0xa8c   :  { %v911_v43 = vsub.f32 %v901_v22, %v909_v39  ;;  %v906_v27 = vpop.xlane.xlu1 %905 }
 0xa8d   :  { %v910_v28 = vsub.f32 %v896_v24, %v906_v27 }
 0xa8e   :  { %v914_v41 = vmul.f32 1.442695, %v911_v43 }
 0xa8f   :  { %v912_v29 = vmul.f32 1.442695, %v910_v28 }
 0xa90   :  { %v1402_v30 = vpop.permute.xlu1 %1401 }
 0xa91   :  { %1433 = vpow2.f32 %v912_v29  ;;  %v1404_v31 = vunpack.i.h.bf16 %v1402_v30  ;;  %v1403_v33 = vunpack.i.l.bf16 %v1402_v30 }
 0xa92   :  { %1435 = vpow2.f32 %v914_v41 }
 0xa93   :  { %v1334_v36 = vpack.c.bf16 %v1404_v31, %v1403_v33 }
 0xa94   :  { %v596_v35 = vpop.permute.xlu1 %595 }
 0xa95   :  { %601 = vst.msk [vmem:[#allocation2 + $0x8] sm:$0xff] %vm599_vm4, %v596_v35  ;;  %1335 = vmatprep.subr.bf16.mxu0 %v1334_v36 }
 0xa96   :  { %1337 = vmatpush3.bf16.msra.mxu0 %v1334_v36 }
 0xa98   :  { %v805_v37 = vpop.permute.xlu1 %804 }
 0xa9b   :  { %v1434_v38 = vpop.eup %1433 }
 0xa9c   :  { %v807_v40 = vpop.permute.xlu1 %806  ;;  %v916_v42 = vsel %vm279_vm3, %v1434_v38, 0.0  ;;  %v1436_v44 = vpop.eup %1435 }
 0xa9d   :  { %812 = vst.msk [vmem:[#allocation2 + $0x8] sm:$0xff] %vm810_vm5, %v807_v40  ;;  %917 = vadd.xlane.f32.xlu0 %v916_v42  ;;  %v919_v45 = vsel %vm279_vm3, %v1436_v44, 0.0 }
 0xaa1   :  { %920 = vadd.xlane.f32.xlu0 %v919_v45 }
 0xab7   :  { %593 = vrot.lane.b32.xlu0 %v1723_v52, %s1538_s10  ;;  %v1338_v52 = vpack.c.bf16 %v1027_v55, %v1026_v54 }
 0xab9   :  { %1339 = vmatprep.subr.bf16.mxu0 %v1338_v52 }
 0xb2a   :  { %v918_v46 = vpop.xlane.xlu0 %917 }
 0xb2b   :  { %1437 = vrcp.f32 %v918_v46 }
 0xb2e   :  { %v921_v47 = vpop.xlane.xlu0 %920 }
 0xb2f   :  { %1439 = vrcp.f32 %v921_v47 }
 0xb32   :  { %v594_v48 = vpop.permute.xlu0 %593 }
 0xb33   :  { %600 = vst.msk [vmem:[#allocation2] sm:$0xff] %vm599_vm4, %v594_v48 }
 0xb34   :  { %811 = vst.msk [vmem:[#allocation2] sm:$0xff] %vm810_vm5, %v805_v37 }
 0xb35   :  { %v1438_v49 = vpop.eup %1437 }
 0xb36   :  { %v924_v50 = vmul.f32 %v1438_v49, %v1434_v38 }
 0xb38   :  { %1276 = vmatprep.mubr.msk.f32.mxu0 %vm279_vm3, %v924_v50 }
 0xb39   :  { %v1440_v51 = vpop.eup %1439 }
 0xb3a   :  { %v925_v53 = vmul.f32 %v1440_v51, %v1436_v44 }
 0xb3c   :  { %1277 = vmatmul.mubr.msk.f32.vlgmr.msra.gmra.mrb[6].mxu0 %vm279_vm3, %v925_v53 }
 0xb3d   :  { %1341 = vmatpush3.bf16.msra.mxu0 %v1338_v52 }
 0xb3e   :  { %1343 = vmatprep.subr.bf16.mxu0 %v1342_v58 }
 0xb41   :  { %1345 = vmatpush3.bf16.msra.mxu0 %v1342_v58 }
 0xc0f   :  { %v1278_v59 = vpop.f32.mrb[6].mxu0 }
 0xc10   :  { %1017 = vrot.lane.b32.xlu1 %v1278_v59, %s1552_s26  ;;  %v1004_v60 = vpop.f32.mrb[7].mxu0 }
 0xc11   :  { %1015 = vrot.lane.b32.xlu0 %v1004_v60, %s1552_s26 }
 0xc82   :  { %v1018_v61 = vpop.permute.xlu1 %1017 }
 0xc83   :  { %1023 = vst.msk [vmem:[#allocation2 + $0x8] sm:$0xff] %vm1021_vm6, %v1018_v61  ;;  %v1016_v62 = vpop.permute.xlu0 %1015 }
 0xc84   :  { %1022 = vst.msk [vmem:[#allocation2] sm:$0xff] %vm1021_vm6, %v1016_v62 }
 0xc8a   :  { %v1025_v0 = vld [vmem:[#allocation2 + $0x8] sm:$0xff] }
 0xc8b   :  { %v1024_v63 = vld [vmem:[#allocation2] sm:$0xff] }
 0xc8c   :  { %1287 = vmatprep.mubr.msk.f32.mxu0 %vm67_vm0, %v1024_v63 }
 0xc8d   :  { %1288 = vmatmul.mubr.msk.f32.vlgmr.msra.gmra.mrb[8].mxu0 %vm67_vm0, %v1025_v0 }
 0xd60   :  { %v1289_v2 = vpop.f32.mrb[8].mxu0 }
 0xd61   :  { %v1115_v3 = vadd.f32 %v1289_v2, %v1165_v1  ;;  %v1109_v4 = vpop.f32.mrb[9].mxu0 }
 0xd62   :  { %v1110_v5 = vadd.f32 %v1165_v1, %v1109_v4 }
 0xd63   :  { %1119 = vst.msk [vmem:[#allocation9 + $0x8] sm:$0xff] %vm67_vm0, %v1115_v3 }
 0xd64   :  { %1118 = vst.msk [vmem:[#allocation9] sm:$0xff] %vm67_vm0, %v1110_v5 }
 0xd65   :  { %1518 = shalt.err (!%p1515_p0)
}
 0xd66   :  { %s1519_s0 = scalar_lea.hbm %s1788_s6, 256 }
 0xd67   :  { %p1520_p1 = scmp.ne.s32.totalorder %s1788_s6, %s1519_s0  ;;  %p1523_p2 = scmp.lt.u32.totalorder %s1519_s0, %s1788_s6 }
 0xd69   :  { %p1525_p3 = pnand %p1523_p2, %p1520_p1 }
 0xd6b   :  { %1528 = shalt.err (!%p1525_p3)
}
 0xd6c   :  { %1131 = dma.vmem_to_hbm [thread:$0]  %s1126_s30, 256, %s1788_s6, [#allocation5], %s1537_s9, %s1537_s9, %s1538_s10  }
 0xd6d   :  { %1533 = dma.done.wait [#allocation5], 256  }
 0xd6e   :  { %1534 = vsyncadd [#allocation5], 4294967040 }
 0xd6f   :  { %1135 = vsyncpa [#allocation4], 1 }
 0xd70   :  { %1136 = vsyncpa [#allocation7], 1 }
 0xd71   :  { %1137 = vsyncpa [#allocation5], 1 }

</bundles_post_ra>
